<compile_context>
chip_gen: v5e
topology: v5e:2x2
jax: 0.10.0
libtpu: 0.0.40
codegen_flags: <defaults>
</compile_context>

<pallas_src>
from functools import partial

import jax
import jax.numpy as jnp
from jax.experimental import pallas as pl
from jax.experimental.pallas import tpu as pltpu


def _vmem_capacity_bytes():
    try:
        return int(pltpu.get_tpu_info().vmem_capacity_bytes)
    except Exception:
        return 64 * 1024 * 1024  # conservative (v7x)


def _upsample_mxu_kernel(x_ref, r_ref, o_ref, *, scale):
    # x_ref: (Rb, W) rows; r_ref: (W, W*s) 0/1 replication matrix (resident);
    # o_ref: (Rb, s*W*s).
    _, w = x_ref.shape
    ws = w * scale
    # HIGHEST precision -> true f32 contraction; with a single 1 per column the
    # result is bit-exact nearest-neighbor replication along W on the MXU.
    prec = jax.lax.Precision.HIGHEST if x_ref.dtype == jnp.float32 else None
    yw = jnp.dot(x_ref[...], r_ref[...],
                 precision=prec,
                 preferred_element_type=jnp.float32).astype(o_ref.dtype)
    # H replication = s plain stores of the same lane-expanded tile.
    for k in range(scale):
        o_ref[:, pl.ds(k * ws, ws)] = yw


def _upsample_vpu_kernel(x_ref, o_ref, *, scale):
    # Fallback for non-float dtypes (v7x MXU has no integer path).
    # TODO(synk): int8 could be cast to bf16 for the MXU path if it matters.
    rb, w = x_ref.shape
    ws = w * scale
    x = x_ref[...]
    yw = jnp.broadcast_to(x[:, :, None], (rb, w, scale)).reshape(rb, ws)
    for k in range(scale):
        o_ref[:, pl.ds(k * ws, ws)] = yw


def upsample_nearest(x, scale_factor):
    """x: (N, C, H, W) -> (N, C, H*s, W*s), nearest-neighbor, integer scale."""
    assert x.ndim == 4, "expected NCHW input"
    s = int(scale_factor)
    # TODO(synk): non-integer scale_factor (PyTorch floor-index rule) and the
    # `size=` argument are not implemented.
    assert s == scale_factor and s >= 1, "only integer scale_factor supported"
    if s == 1:
        return x

    N, C, H, W = x.shape
    total_rows = N * C * H
    ws = W * s
    dtype = x.dtype
    itemsize = jnp.dtype(dtype).itemsize
    sub = max(8, 32 // max(1, itemsize))          # sublane multiple per dtype
    use_mxu = (dtype == jnp.float32) or (dtype == jnp.bfloat16)

    # ---- generation-aware VMEM budget ----
    vmem_cap = _vmem_capacity_bytes()
    if vmem_cap >= 100 * (1 << 20):               # v5e / v6e (128 MiB physical)
        vmem_limit = 96 * (1 << 20)
    else:                                         # v7x (64 MiB physical)
        vmem_limit = 56 * (1 << 20)
    usable = (vmem_limit * 5) // 8                # headroom: scratch, R, regs

    # Per-row VMEM cost: double-buffered in/out blocks + f32 matmul result.
    per_row = 2 * (W + s * ws) * itemsize + s * ws * 4
    budget_rows = max(1, usable // per_row)

    rb = min(total_rows, budget_rows)
    # Keep >= 4 grid steps when possible so both v7x TensorCores get work and
    # the pipeline has overlap (harmless on single-core parts).
    min_steps = 4
    if total_rows >= min_steps * sub:
        rb = min(rb, pl.cdiv(total_rows, min_steps))
    if rb < total_rows:
        rb = max(sub, (rb // sub) * sub)          # keep sublane alignment
    rb = min(rb, total_rows)
    grid = (pl.cdiv(total_rows, rb),)

    bytes_accessed = total_rows * W * itemsize * (1 + s * s)
    cost = pl.CostEstimate(
        flops=2 * total_rows * W * ws if use_mxu else 0,
        transcendentals=0,
        bytes_accessed=bytes_accessed)
    cparams = pltpu.CompilerParams(
        dimension_semantics=("parallel",),
        vmem_limit_bytes=vmem_limit)

    x2 = x.reshape(total_rows, W)
    out_shape = jax.ShapeDtypeStruct((total_rows, s * ws), dtype)
    in_row_spec = pl.BlockSpec((rb, W), lambda i: (i, 0))
    out_row_spec = pl.BlockSpec((rb, s * ws), lambda i: (i, 0))

    if use_mxu:
        # 0/1 replication matrix: R[k, j] = (j // s == k); x_row @ R == repeat.
        r = (jnp.arange(W, dtype=jnp.int32)[:, None]
             == (jnp.arange(ws, dtype=jnp.int32)[None, :] // s)).astype(dtype)
        out = pl.pallas_call(
            partial(_upsample_mxu_kernel, scale=s),
            out_shape=out_shape,
            grid=grid,
            in_specs=[in_row_spec,
                      pl.BlockSpec((W, ws), lambda i: (0, 0))],  # VMEM-resident
            out_specs=out_row_spec,
            compiler_params=cparams,
            cost_estimate=cost,
        )(x2, r)
    else:
        out = pl.pallas_call(
            partial(_upsample_vpu_kernel, scale=s),
            out_shape=out_shape,
            grid=grid,
            in_specs=[in_row_spec],
            out_specs=out_row_spec,
            compiler_params=cparams,
            cost_estimate=cost,
        )(x2)

    # (N*C*H, s*W*s) == (N, C, H, s, W*s) -> (N, C, H*s, W*s): free reshape.
    return out.reshape(N, C, H * s, W * s)


class Upsample:
    """Mirror of the PyTorch module (no parameters)."""

    def __init__(self, scale_factor, mode='nearest'):
        self.scale_factor = scale_factor
        self.mode = mode

    def __call__(self, x):
        # TODO(synk): only mode='nearest' implemented (bilinear etc. unused here).
        assert self.mode == 'nearest'
        return upsample_nearest(x, self.scale_factor)


if __name__ == "__main__":
    key = jax.random.PRNGKey(0)

    # primary test: small NCHW input (non-128-multiple W*s, offset stores)
    x = jax.random.normal(key, (2, 4, 16, 16), dtype=jnp.float32)
    up = Upsample(scale_factor=2, mode='nearest')
    y = up(x)
    jax.block_until_ready(y)
    ref = jnp.repeat(jnp.repeat(x, 2, axis=2), 2, axis=3)
    assert y.shape == (2, 4, 32, 32), y.shape
    assert y.dtype == x.dtype
    assert jnp.array_equal(y, ref), "mismatch vs reference nearest upsample (test 1)"

    # lane-aligned path: W*s is a multiple of 128 -> fully dense stores
    x2 = jax.random.normal(jax.random.PRNGKey(1), (1, 2, 16, 128), dtype=jnp.float32)
    y2 = Upsample(scale_factor=2)(x2)
    jax.block_until_ready(y2)
    ref2 = jnp.repeat(jnp.repeat(x2, 2, axis=2), 2, axis=3)
    assert y2.shape == (1, 2, 32, 256)
    assert jnp.array_equal(y2, ref2), "mismatch vs reference nearest upsample (test 2)"

    # odd scale factor: exercises unaligned lane-offset stores and small grid
    x3 = jax.random.normal(jax.random.PRNGKey(2), (1, 2, 8, 16), dtype=jnp.float32)
    y3 = Upsample(scale_factor=3)(x3)
    jax.block_until_ready(y3)
    ref3 = jnp.repeat(jnp.repeat(x3, 3, axis=2), 3, axis=3)
    assert y3.shape == (1, 2, 24, 48)
    assert jnp.array_equal(y3, ref3), "mismatch vs reference nearest upsample (test 3)"

    print("KERNEL_OK")
</pallas_src>

<mosaic_0001>
module attributes {stable_mosaic.version = 11 : i64} {
  func.func @_upsample_mxu_kernel(%arg0: i32, %arg1: memref<32x16xf32, #tpu.memory_space<vmem>>, %arg2: memref<16x32xf32, #tpu.memory_space<vmem>>, %arg3: memref<32x64xf32, #tpu.memory_space<vmem>>) attributes {dimension_semantics = [#tpu.dimension_semantics<parallel>], iteration_bounds = array<i64: 4>, scalar_prefetch = 0 : i64, scratch_operands = 0 : i64, tpu.core_type = #tpu.core_type<tc>, window_params = [{transform_indices = @transform_0, window_bounds = array<i64: 32, 16>}, {pipeline_mode = #tpu.pipeline_mode<synchronous>, transform_indices = @transform_1, window_bounds = array<i64: 16, 32>}, {transform_indices = @transform_2, window_bounds = array<i64: 32, 64>}]} {
    %c0 = arith.constant 0 : index
    %c0_0 = arith.constant 0 : index
    %0 = vector.load %arg1[%c0, %c0_0] : memref<32x16xf32, #tpu.memory_space<vmem>>, vector<32x16xf32>
    %c0_1 = arith.constant 0 : index
    %c0_2 = arith.constant 0 : index
    %1 = vector.load %arg2[%c0_1, %c0_2] : memref<16x32xf32, #tpu.memory_space<vmem>>, vector<16x32xf32>
    %cst = arith.constant dense<0.000000e+00> : vector<32x32xf32>
    %2 = tpu.matmul %0, %1, %cst {dimension_numbers = #tpu.dot_dimension_numbers<[1], [0], [0], [1], [0, 0, 1, 1], [], []>, precision = #tpu.contract_precision<fp32>} : vector<32x16xf32>, vector<16x32xf32>, vector<32x32xf32> -> vector<32x32xf32>
    %c0_3 = arith.constant 0 : index
    %c0_4 = arith.constant 0 : index
    %3 = vector.load %arg3[%c0_3, %c0_4] : memref<32x64xf32, #tpu.memory_space<vmem>>, vector<32x32xf32>
    tpu.vector_store %arg3[%c0_3, %c0_4], %2 {strides = array<i32>} : memref<32x64xf32, #tpu.memory_space<vmem>>, vector<32x32xf32>,
    %c0_5 = arith.constant 0 : index
    %c32 = arith.constant 32 : index
    %4 = vector.load %arg3[%c0_5, %c32] : memref<32x64xf32, #tpu.memory_space<vmem>>, vector<32x32xf32>
    tpu.vector_store %arg3[%c0_5, %c32], %2 {strides = array<i32>} : memref<32x64xf32, #tpu.memory_space<vmem>>, vector<32x32xf32>,
    return
  }
  func.func @transform_0(%arg0: i32) -> (i32, i32) {
    %c0_i32 = arith.constant 0 : i32
    %c0_i32_0 = arith.constant 0 : i32
    return %arg0, %c0_i32 : i32, i32
  }
  func.func @transform_1(%arg0: i32) -> (i32, i32) {
    %c0_i32 = arith.constant 0 : i32
    %c0_i32_0 = arith.constant 0 : i32
    %c0_i32_1 = arith.constant 0 : i32
    return %c0_i32, %c0_i32_0 : i32, i32
  }
  func.func @transform_2(%arg0: i32) -> (i32, i32) {
    %c0_i32 = arith.constant 0 : i32
    %c0_i32_0 = arith.constant 0 : i32
    return %arg0, %c0_i32 : i32, i32
  }
}

</mosaic_0001>

<bundles_post_ra>
// kernel: tpu_custom_call.1
= control target key start
LH: loop header
LB: loop body
LE: loop exit
PB: predicated region body
PF: predicated region fallthrough
CT: control target
= control target key end

     0   :  { %s548_s9 = smov 0   ;;  %s596_s0 = inlined_call_operand.vmem [shape: f32[128,16], index: 0, kind: input, shape index: {}]   ;;  %s597_s1 = inlined_call_operand.vmem [shape: f32[16,32], index: 1, kind: input, shape index: {}]   ;;  %s598_s2 = inlined_call_operand.vmem [shape: f32[128,64], index: 2, kind: output, shape index: {}]  }
   0x1 LB: > { %s500_s10 = sadd.s32 4294967295, %s530_s9   ;;  %p504_p0 = scmp.ge.s32.totalorder %s530_s9, 1  ;;  %s530_s9 = sphi %s548_s9, %s12_s9  }
   0x2   : > { %p113_p1 = scmp.lt.s32.totalorder %s530_s9, 5 }
   0x4   : > { %p114_p2 = pnand %p504_p0, %p113_p1 }
   0x5   : > { %s505_s15 = sshll.u32 (!%p114_p2), %s500_s10, 2  ;;  %s532_s23 = smov (!%p114_p2), 32  }
   0x6   : > { %117 = sbr.rel (%p114_p2) target bundleno = 323 (0x143), region = 28  ;;  %p136_p3 = scmp.lt.s32.totalorder (!%p114_p2), %s505_s15, 15 }
   0xb   : > { %v152_v0 = vld [vmem:[%s597_s1 + $0x8] sm:$0xff]  ;;  %v151_v1 = vld [vmem:[%s597_s1] sm:$0xff]  ;;  %s600_s15 = smov (!%p136_p3, %s505_s15), 15  ;;  %vm153_vm0 = vcmask 130048   ;;  %vm418_vm1 = vcmask 261120   ;;  %vm439_vm2 = vcmask 523520  }
   0xc   : > { %v180_v2 = vand.u32 4294901760, %v152_v0  ;;  %v182_v3 = vand.u32 4294901760, %v151_v1  ;;  %s506_s16 = sshll.u32 %s600_s15, 3 }
   0xd   : > { %s139_s19 = scalar_lea.vmem %s596_s0, %s506_s16  ;;  %s579_s22 = scalar_lea.vmem %s598_s2, %s506_s16 }
   0xe   : > { %511 = vmatpush.msra.mxu2 %v180_v2  ;;  %v232_v4 = vsub.f32 %v152_v0, %v180_v2  ;;  %v238_v5 = vsub.f32 %v151_v1, %v182_v3  ;;  %181 = vmatpush.msra.mxu0 %v180_v2  ;;  %v149_v10 = vld [vmem:[%s139_s19 + $0x10] sm:$0xff]  ;;  %v150_v11 = vld [vmem:[%s139_s19 + $0x18] sm:$0xff]  ;;  %v147_v12 = vld [vmem:[%s139_s19] sm:$0xff] }
   0xf   : > { %v161_v13 = vsel %vm153_vm0, %v149_v10, 0  ;;  %v164_v14 = vsel %vm153_vm0, %v150_v11, 0  ;;  %v155_v15 = vsel %vm153_vm0, %v147_v12, 0  ;;  %v148_v16 = vld [vmem:[%s139_s19 + $0x8] sm:$0xff] }
  0x10   : > { %v233_v6 = vand.u32 4294901760, %v232_v4  ;;  %512 = vmatpush.msra.mxu2 %v182_v3  ;;  %v239_v7 = vand.u32 4294901760, %v238_v5  ;;  %183 = vmatpush.msra.mxu0 %v182_v3  ;;  %v200_v19 = vand.u32 4294901760, %v161_v13  ;;  %v208_v20 = vand.u32 4294901760, %v164_v14 }
  0x11   : > { %v184_v21 = vand.u32 4294901760, %v155_v15  ;;  %v158_v22 = vsel %vm153_vm0, %v148_v16, 0 }
  0x12   : > { %276 = vmatpush.msrb.mxu2 %v232_v4  ;;  %v234_v8 = vsub.f32 %v232_v4, %v233_v6  ;;  %v240_v9 = vsub.f32 %v238_v5, %v239_v7  ;;  %361 = vmatpush.msrb.mxu0 %v233_v6  ;;  %v201_v23 = vsub.f32 %v161_v13, %v200_v19  ;;  %v192_v25 = vand.u32 4294901760, %v158_v22 }
  0x13   : > { %v209_v24 = vsub.f32 %v164_v14, %v208_v20  ;;  %v185_v26 = vsub.f32 %v155_v15, %v184_v21 }
  0x14   : > { %279 = vmatpush.msrb.mxu2 %v238_v5  ;;  %v235_v17 = vand.u32 4294901760, %v234_v8  ;;  %v241_v18 = vand.u32 4294901760, %v240_v9  ;;  %365 = vmatpush.msrb.mxu0 %v239_v7  ;;  %v202_v27 = vand.u32 4294901760, %v201_v23  ;;  %v193_v28 = vsub.f32 %v158_v22, %v192_v25 }
  0x15   : > { %v186_v29 = vand.u32 4294901760, %v185_v26  ;;  %v210_v31 = vand.u32 4294901760, %v209_v24 }
  0x16   : > { %513 = vmatpush.msra.mxu3 %v235_v17  ;;  %236 = vmatpush.msra.mxu1 %v235_v17  ;;  %v203_v30 = vsub.f32 %v201_v23, %v202_v27  ;;  %v194_v33 = vand.u32 4294901760, %v193_v28 }
  0x17   : > { %v187_v32 = vsub.f32 %v185_v26, %v186_v29  ;;  %v211_v36 = vsub.f32 %v209_v24, %v210_v31 }
  0x18   : > { %514 = vmatpush.msra.mxu3 %v241_v18  ;;  %242 = vmatpush.msra.mxu1 %v241_v18  ;;  %v204_v34 = vand.u32 4294901760, %v203_v30  ;;  %v195_v37 = vsub.f32 %v193_v28, %v194_v33 }
  0x19   : > { %252 = vmatmul.f32.vlgmr.msra.gmra.mxu3 %v200_v19  ;;  %244 = vmatmul.f32.vlgmr.msra.gmra.mxu1 %v184_v21  ;;  %v188_v35 = vand.u32 4294901760, %v187_v32  ;;  %v212_v38 = vand.u32 4294901760, %v211_v36 }
  0x1a   : > { %316 = vmatpush.msrb.mxu3 %v180_v2  ;;  %398 = vmatpush.msrb.mxu1 %v180_v2  ;;  %v196_v39 = vand.u32 4294901760, %v195_v37 }
  0x1b   : > { %205 = vmatmul.f32.vlgmr.msra.gmra.mxu2 %v204_v34  ;;  %189 = vmatmul.f32.vlgmr.msra.gmra.mxu0 %v188_v35 }
  0x1c   : > { %318 = vmatpush.msrb.mxu3 %v182_v3  ;;  %400 = vmatpush.msrb.mxu1 %v182_v3 }
  0x21   : > { %256 = vmatmul.f32.gmra.mxu3 %v208_v20  ;;  %248 = vmatmul.f32.gmra.mxu1 %v192_v25 }
  0x23   : > { %213 = vmatmul.f32.gmra.mxu2 %v212_v38  ;;  %197 = vmatmul.f32.gmra.mxu0 %v196_v39 }
  0x29   : > { %322 = vmatmul.f32.vlgmr.msrb.gmra.mxu3 %v186_v29  ;;  %402 = vmatmul.f32.vlgmr.msrb.gmra.mxu1 %v184_v21 }
  0x2b   : > { %282 = vmatmul.f32.vlgmr.msrb.gmra.mxu2 %v185_v26  ;;  %367 = vmatmul.f32.vlgmr.msrb.gmra.mxu0 %v184_v21 }
  0x31   : > { %328 = vmatmul.f32.gmra.mxu3 %v194_v33  ;;  %406 = vmatmul.f32.gmra.mxu1 %v192_v25 }
  0x33   : > { %287 = vmatmul.f32.gmra.mxu2 %v193_v28  ;;  %371 = vmatmul.f32.gmra.mxu0 %v192_v25 }
  0x39   : > { %334 = vmatmul.f32.gmra.mxu3 %v202_v27  ;;  %410 = vmatmul.f32.gmra.mxu1 %v200_v19 }
  0x3b   : > { %292 = vmatmul.f32.gmra.mxu2 %v201_v23  ;;  %375 = vmatmul.f32.gmra.mxu0 %v200_v19 }
  0x41   : > { %340 = vmatmul.f32.gmra.mxu3 %v210_v31  ;;  %414 = vmatmul.f32.gmra.mxu1 %v208_v20 }
  0x43   : > { %297 = vmatmul.f32.gmra.mxu2 %v209_v24  ;;  %379 = vmatmul.f32.gmra.mxu0 %v208_v20 }
  0x96   : > { %v245_v42 = vpop.f32.mrf.mxu1 }
  0x98   : > { %v190_v41 = vpop.f32.mrf.mxu0 }
  0x99   : > { %v246_v51 = vadd.f32 %v245_v42, %v190_v41 }
  0x9c   : > { %v253_v40 = vpop.f32.mrf.mxu3 }
  0x9e   : > { %v206_v43 = vpop.f32.mrf.mxu2  ;;  %v249_v46 = vpop.f32.mrf.mxu1 }
  0x9f   : > { %v254_v2 = vadd.f32 %v253_v40, %v206_v43 }
  0xa0   : > { %v198_v45 = vpop.f32.mrf.mxu0 }
  0xa1   : > { %v250_v58 = vadd.f32 %v249_v46, %v198_v45 }
  0xa4   : > { %v257_v44 = vpop.f32.mrf.mxu3 }
  0xa6   : > { %v214_v47 = vpop.f32.mrf.mxu2  ;;  %v403_v50 = vpop.f32.mrf.mxu1 }
  0xa7   : > { %v258_v10 = vadd.f32 %v257_v44, %v214_v47 }
  0xa8   : > { %v368_v49 = vpop.f32.mrf.mxu0 }
  0xac   : > { %v323_v48 = vpop.f32.mrf.mxu3 }
  0xae   : > { %v283_v52 = vpop.f32.mrf.mxu2  ;;  %v407_v61 = vpop.f32.mrf.mxu1 }
  0xaf   : > { %v284_v53 = vadd.f32 %v283_v52, %v246_v51 }
  0xb0   : > { %v372_v57 = vpop.f32.mrf.mxu0 }
  0xb1   : > { %v324_v54 = vadd.f32 %v323_v48, %v284_v53 }
  0xb3   : > { %v369_v56 = vadd.f32 %v368_v49, %v324_v54 }
  0xb4   : > { %v329_v55 = vpop.f32.mrf.mxu3 }
  0xb5   : > { %v404_v59 = vadd.f32 %v403_v50, %v369_v56 }
  0xb6   : > { %v288_v60 = vpop.f32.mrf.mxu2  ;;  %v411_v7 = vpop.f32.mrf.mxu1 }
  0xb7   : > { %419 = vst.msk [vmem:[%s579_s22] sm:$0xff] %vm418_vm1, %v404_v59  ;;  %v289_v62 = vadd.f32 %v288_v60, %v250_v58  ;;  %427 = vrot.lane.b32.xlu0 %v404_v59, %s532_s23 }
  0xb8   : > { %v376_v5 = vpop.f32.mrf.mxu0 }
  0xb9   : > { %v330_v63 = vadd.f32 %v329_v55, %v289_v62 }
  0xbb   : > { %v373_v0 = vadd.f32 %v372_v57, %v330_v63 }
  0xbc   : > { %v335_v1 = vpop.f32.mrf.mxu3 }
  0xbd   : > { %v408_v3 = vadd.f32 %v407_v61, %v373_v0 }
  0xbe   : > { %v293_v4 = vpop.f32.mrf.mxu2  ;;  %v415_v17 = vpop.f32.mrf.mxu1 }
  0xbf   : > { %420 = vst.msk [vmem:[%s579_s22 + $0x8] sm:$0xff] %vm418_vm1, %v408_v3  ;;  %v294_v6 = vadd.f32 %v293_v4, %v254_v2  ;;  %429 = vrot.lane.b32.xlu0 %v408_v3, %s532_s23 }
  0xc0   : > { %v380_v15 = vpop.f32.mrf.mxu0 }
  0xc1   : > { %v336_v8 = vadd.f32 %v335_v1, %v294_v6 }
  0xc3   : > { %v377_v9 = vadd.f32 %v376_v5, %v336_v8 }
  0xc4   : > { %v341_v13 = vpop.f32.mrf.mxu3 }
  0xc5   : > { %v412_v11 = vadd.f32 %v411_v7, %v377_v9 }
  0xc6   : > { %v298_v12 = vpop.f32.mrf.mxu2 }
  0xc7   : > { %421 = vst.msk [vmem:[%s579_s22 + $0x10] sm:$0xff] %vm418_vm1, %v412_v11  ;;  %v299_v14 = vadd.f32 %v298_v12, %v258_v10  ;;  %431 = vrot.lane.b32.xlu1 %v412_v11, %s532_s23 }
  0xc9   : > { %v342_v16 = vadd.f32 %v341_v13, %v299_v14 }
  0xcb   : > { %v381_v18 = vadd.f32 %v380_v15, %v342_v16 }
  0xcd   : > { %v416_v19 = vadd.f32 %v415_v17, %v381_v18 }
  0xcf   : > { %422 = vst.msk [vmem:[%s579_s22 + $0x18] sm:$0xff] %vm418_vm1, %v416_v19  ;;  %433 = vrot.lane.b32.xlu1 %v416_v19, %s532_s23 }
 0x129   : > { %v428_v20 = vpop.permute.xlu0 %427 }
 0x12a   : > { %440 = vst.msk [vmem:[%s579_s22] sm:$0xff] %vm439_vm2, %v428_v20 }
 0x131   : > { %v430_v21 = vpop.permute.xlu0 %429 }
 0x132   : > { %441 = vst.msk [vmem:[%s579_s22 + $0x8] sm:$0xff] %vm439_vm2, %v430_v21 }
 0x139   : > { %v432_v22 = vpop.permute.xlu1 %431 }
 0x13a   : > { %442 = vst.msk [vmem:[%s579_s22 + $0x10] sm:$0xff] %vm439_vm2, %v432_v22 }
 0x141   : > { %v434_v23 = vpop.permute.xlu1 %433 }
 0x142   : > { %443 = vst.msk [vmem:[%s579_s22 + $0x18] sm:$0xff] %vm439_vm2, %v434_v23 }
 0x143 PF: > { %s12_s9 = sadd.s32 1, %s530_s9  }
 0x144   : > { %p9_p4 = scmp.ge.s32.totalorder %s12_s9, 6  }
 0x146   :  { %11 = sbr.rel (!%p9_p4) target bundleno = 1 (0x1), region = 58 }

</bundles_post_ra>
